<compile_context>
chip_gen: v7x
topology: tpu7x:2x2x1
jax: 0.10.0
libtpu: 0.0.40
codegen_flags: <defaults>
</compile_context>

<pallas_src>
import jax
import jax.numpy as jnp
from jax import lax
from jax.experimental import pallas as pl
from jax.experimental.pallas import tpu as pltpu


_ONE_HOT_MAX_DEFAULT = 512   # use the MXU one-hot gather only for tiny tables
_HEADROOM_BYTES = 4 << 20    # compiler internal scratch / misc headroom


def _round_up(v, m):
    return ((v + m - 1) // m) * m


def _pad_row_bytes(ncols, itemsize):
    # One VMEM row is padded to a multiple of 128 lanes (conservative).
    return _round_up(max(ncols, 1), 128) * itemsize


def _vmem_capacity_bytes():
    """Generation-aware physical VMEM (128 MiB v5e/v6e, 64 MiB per-TC v7x)."""
    try:
        info = pltpu.get_tpu_info()
        cap = int(getattr(info, "vmem_capacity_bytes", 0) or 0)
        if cap > 0:
            return cap
    except Exception:
        pass
    return 128 << 20


def _pick_tile_b(batch, hbm_row_bytes, vmem_row_bytes, vmem_row_budget):
    """Choose the batch tile.

    Goals: >= ~1 MiB of HBM traffic per grid step, >= 2 grid steps when the
    batch allows (v7x megacore), fits the per-tile VMEM budget, and prefers a
    divisor of `batch` (multiple of 8) so no pad/slice pass is needed.
    """
    if batch <= 8:
        return batch  # single full-batch tile (block == full array is allowed)
    target = _round_up(max((1 << 20) // max(hbm_row_bytes, 1), 8), 8)
    target = min(target, _round_up((batch + 1) // 2, 8))       # >= 2 grid steps
    max_rows = max((vmem_row_budget // max(vmem_row_bytes, 1)) // 8 * 8, 8)
    target = max(8, min(target, max_rows, 8192))
    if batch % target == 0:
        return target
    for cand in range(target, 7, -8):                          # divisor search
        if batch % cand == 0 and cand >= max(8, target // 4):
            return cand
    return target


def _onehot_kernel(ids_ref, emb_ref, x_ref, out_ref):
    # ids_ref : (TILE_B, 1)        int32
    # emb_ref : (stu_num, pp_dim)  float   -- small table, VMEM-resident
    # x_ref   : (TILE_B, feat_dim) float
    # out_ref : (TILE_B, pp_dim + feat_dim)
    ids = ids_ref[...]
    tile_b = ids.shape[0]
    stu_num = emb_ref.shape[0]
    # In-VMEM gather as a one-hot MXU matmul; only used when stu_num is tiny,
    # so the (TILE_B, stu_num) temporaries and the extra MACs are negligible.
    iota = lax.broadcasted_iota(jnp.int32, (tile_b, stu_num), 1)
    one_hot = (ids == iota).astype(emb_ref.dtype)
    emb_tile = jnp.dot(one_hot, emb_ref[...],
                       preferred_element_type=jnp.float32)
    # Single lane-dense store (out_dim is usually < 128 lanes -> one masked vst).
    out_ref[...] = jnp.concatenate(
        [emb_tile.astype(out_ref.dtype), x_ref[...]], axis=-1)


def _gather_kernel(ids_smem, emb_ref, x_ref, out_ref, emb_scratch):
    # ids_smem    : (padded_batch,) int32  -- scalar-prefetched ids in SMEM
    # emb_ref     : (stu_num, pp_dim)      -- full table, VMEM-resident
    # x_ref       : (TILE_B, feat_dim)
    # out_ref     : (TILE_B, pp_dim + feat_dim)
    # emb_scratch : (TILE_B, pp_dim) VMEM scratch for the gathered rows
    tile_b = out_ref.shape[0]
    stu_num = emb_ref.shape[0]
    base = pl.program_id(0) * tile_b

    def body(r, carry):
        # Clamp out-of-range ids (nn.Embedding would raise; we clamp like jnp.take).
        sid = jnp.clip(ids_smem[base + r], 0, stu_num - 1)
        emb_scratch[pl.ds(r, 1), :] = emb_ref[pl.ds(sid, 1), :]
        return carry

    lax.fori_loop(0, tile_b, body, 0)
    out_ref[...] = jnp.concatenate(
        [emb_scratch[...].astype(out_ref.dtype), x_ref[...]], axis=-1)


def transform_stu(x, stu_id, ability_emb_weight, *, tile_b=None,
                  one_hot_max=_ONE_HOT_MAX_DEFAULT):
    """Pallas implementation of Transform_Stu.forward.

    Args:
      x: float [batch, feat_dim]
      stu_id: int [batch]
      ability_emb_weight: float [stu_num, pp_dim]
    Returns:
      [batch, pp_dim + feat_dim] with dtype of x.

    Notes:
      * The table is cast to x.dtype (documented precision loss if the table is
        higher precision than x).
      * Out-of-range ids: gather path clamps, one-hot path yields a zero row
        (PyTorch would raise).
    """
    batch, feat_dim = x.shape
    stu_num, pp_dim = ability_emb_weight.shape
    out_dim = pp_dim + feat_dim

    if ability_emb_weight.dtype != x.dtype:
        ability_emb_weight = ability_emb_weight.astype(x.dtype)
    stu_id = stu_id.astype(jnp.int32)

    isz = jnp.dtype(x.dtype).itemsize
    usable = int(_vmem_capacity_bytes() * 0.72)   # leave headroom under physical VMEM

    # Resident table occupies 2x (BlockSpec inputs are double-buffered even for a
    # constant index map; the DMA itself is only issued once).
    # TODO(synk): single-buffer the table (pl.Buffered(1) / manual DMA) once that
    # path is robust across generations; would halve the table VMEM footprint.
    table_vmem = 2 * _round_up(max(stu_num, 8), 8) * _pad_row_bytes(pp_dim, isz)

    use_one_hot = stu_num <= one_hot_max
    if use_one_hot:
        # double-buffered ids + x + out, plus one-hot/iota temporaries.
        vmem_row = (2 * (_pad_row_bytes(1, 4) + _pad_row_bytes(feat_dim, isz)
                         + _pad_row_bytes(out_dim, isz))
                    + 2 * _pad_row_bytes(stu_num, 4))
    else:
        # double-buffered x + out, plus the gather scratch.
        vmem_row = (2 * (_pad_row_bytes(feat_dim, isz) + _pad_row_bytes(out_dim, isz))
                    + _pad_row_bytes(pp_dim, isz))
    hbm_row = (feat_dim + out_dim) * isz + 4

    vmem_row_budget = usable - table_vmem - _HEADROOM_BYTES
    if vmem_row_budget < vmem_row * min(batch, 8):
        # Table (double-buffered) does not fit this generation's VMEM.
        # TODO(synk): chunked / scalar-prefetch DMA row-gather kernel (HBM-resident
        # table + make_async_copy) for very large stu_num, esp. on v7x (64 MiB VMEM).
        return jnp.concatenate(
            [jnp.take(ability_emb_weight, stu_id, axis=0), x], axis=1)

    if tile_b is None:
        tile_b = _pick_tile_b(batch, hbm_row, vmem_row, vmem_row_budget)
    tile_b = max(1, min(int(tile_b), batch))
    if tile_b != batch and tile_b % 8 != 0:
        tile_b = max(8, (tile_b // 8) * 8)

    num_tiles = pl.cdiv(batch, tile_b)
    padded = num_tiles * tile_b
    if padded != batch:
        # Padded rows gather id 0 and are sliced off afterwards.
        x_in = jnp.pad(x, ((0, padded - batch), (0, 0)))
        ids_in = jnp.pad(stu_id, (0, padded - batch))
    else:
        x_in, ids_in = x, stu_id

    need = table_vmem + tile_b * vmem_row + _HEADROOM_BYTES
    vmem_limit = int(min(usable, max(need, 32 << 20)))

    cparams = pltpu.CompilerParams(
        dimension_semantics=("parallel",),
        vmem_limit_bytes=vmem_limit)
    out_shape = jax.ShapeDtypeStruct((padded, out_dim), x.dtype)

    if use_one_hot:
        ids_2d = ids_in.reshape(padded, 1)
        grid_spec = pltpu.PrefetchScalarGridSpec(
            num_scalar_prefetch=0,
            grid=(num_tiles,),
            in_specs=[
                pl.BlockSpec((tile_b, 1), lambda i: (i, 0)),
                # Full table, same block every step -> DMA'd once, VMEM-resident.
                pl.BlockSpec((stu_num, pp_dim), lambda i: (0, 0)),
                pl.BlockSpec((tile_b, feat_dim), lambda i: (i, 0)),
            ],
            out_specs=pl.BlockSpec((tile_b, out_dim), lambda i: (i, 0)),
        )
        out = pl.pallas_call(
            _onehot_kernel, grid_spec=grid_spec, out_shape=out_shape,
            compiler_params=cparams,
        )(ids_2d, ability_emb_weight, x_in)
    else:
        grid_spec = pltpu.PrefetchScalarGridSpec(
            num_scalar_prefetch=1,          # stu_id -> SMEM, read as scalars
            grid=(num_tiles,),
            in_specs=[
                pl.BlockSpec((stu_num, pp_dim), lambda i, ids: (0, 0)),
                pl.BlockSpec((tile_b, feat_dim), lambda i, ids: (i, 0)),
            ],
            out_specs=pl.BlockSpec((tile_b, out_dim), lambda i, ids: (i, 0)),
            scratch_shapes=[pltpu.VMEM((tile_b, pp_dim), x.dtype)],
        )
        out = pl.pallas_call(
            _gather_kernel, grid_spec=grid_spec, out_shape=out_shape,
            compiler_params=cparams,
        )(ids_in, ability_emb_weight, x_in)

    if padded != batch:
        out = out[:batch]
    return out


if __name__ == "__main__":
    key = jax.random.PRNGKey(0)

    # --- Test 1: tiny table -> one-hot MXU gather path (default) ----------
    stu_num, pp_dim = 10, 32
    batch, feat_dim = 4, 16
    k1, k2, k3, key = jax.random.split(key, 4)
    W = jax.random.normal(k1, (stu_num, pp_dim), jnp.float32)
    x = jax.random.normal(k2, (batch, feat_dim), jnp.float32)
    sid = jax.random.randint(k3, (batch,), 0, stu_num, jnp.int32)
    out = jax.block_until_ready(transform_stu(x, sid, W))
    ref = jnp.concatenate([W[sid], x], axis=1)
    assert out.shape == (batch, pp_dim + feat_dim)
    assert jnp.allclose(out, ref), "one-hot path mismatch"

    # --- Test 2: row-gather path (forced) with a multi-tile grid ----------
    stu_num2, batch2 = 40, 16
    k1, k2, k3, key = jax.random.split(key, 4)
    W2 = jax.random.normal(k1, (stu_num2, pp_dim), jnp.float32)
    x2 = jax.random.normal(k2, (batch2, feat_dim), jnp.float32)
    sid2 = jax.random.randint(k3, (batch2,), 0, stu_num2, jnp.int32)
    out2 = jax.block_until_ready(transform_stu(x2, sid2, W2, one_hot_max=0))
    ref2 = jnp.concatenate([W2[sid2], x2], axis=1)
    assert out2.shape == (batch2, pp_dim + feat_dim)
    assert jnp.allclose(out2, ref2), "gather path mismatch"

    # --- Test 3: ragged batch (exercises pad + slice path) ----------------
    batch3 = 20
    k1, k2, key = jax.random.split(key, 3)
    x3 = jax.random.normal(k1, (batch3, feat_dim), jnp.float32)
    sid3 = jax.random.randint(k2, (batch3,), 0, stu_num, jnp.int32)
    out3 = jax.block_until_ready(transform_stu(x3, sid3, W))
    ref3 = jnp.concatenate([W[sid3], x3], axis=1)
    assert out3.shape == (batch3, pp_dim + feat_dim)
    assert jnp.allclose(out3, ref3), "padded path mismatch"

    print("KERNEL_OK")
</pallas_src>

<mosaic_0001>
module attributes {stable_mosaic.version = 11 : i64} {
  func.func @_onehot_kernel(%arg0: i32, %arg1: memref<4x1xi32, #tpu.memory_space<vmem>>, %arg2: memref<10x32xf32, #tpu.memory_space<vmem>>, %arg3: memref<4x16xf32, #tpu.memory_space<vmem>>, %arg4: memref<4x48xf32, #tpu.memory_space<vmem>>) attributes {dimension_semantics = [#tpu.dimension_semantics<parallel>], iteration_bounds = array<i64: 1>, scalar_prefetch = 0 : i64, scratch_operands = 0 : i64, tpu.core_type = #tpu.core_type<tc>, window_params = [{transform_indices = @transform_0, window_bounds = array<i64: 4, 1>}, {pipeline_mode = #tpu.pipeline_mode<synchronous>, transform_indices = @transform_1, window_bounds = array<i64: 10, 32>}, {transform_indices = @transform_2, window_bounds = array<i64: 4, 16>}, {transform_indices = @transform_3, window_bounds = array<i64: 4, 48>}]} {
    %c0 = arith.constant 0 : index
    %c0_0 = arith.constant 0 : index
    %0 = vector.load %arg1[%c0, %c0_0] : memref<4x1xi32, #tpu.memory_space<vmem>>, vector<4x1xi32>
    %1 = tpu.iota {dimensions = array<i32: 1>} : vector<4x10xi32>
    %2 = vector.broadcast %0 : vector<4x1xi32> to vector<4x10xi32>
    %3 = arith.cmpi eq, %2, %1 : vector<4x10xi32>
    %4 = arith.extui %3 : vector<4x10xi1> to vector<4x10xi32>
    %5 = arith.sitofp %4 : vector<4x10xi32> to vector<4x10xf32>
    %c0_1 = arith.constant 0 : index
    %c0_2 = arith.constant 0 : index
    %6 = vector.load %arg2[%c0_1, %c0_2] : memref<10x32xf32, #tpu.memory_space<vmem>>, vector<10x32xf32>
    %cst = arith.constant dense<0.000000e+00> : vector<4x32xf32>
    %7 = tpu.matmul %5, %6, %cst {dimension_numbers = #tpu.dot_dimension_numbers<[1], [0], [0], [1], [0, 0, 1, 1], [], []>} : vector<4x10xf32>, vector<10x32xf32>, vector<4x32xf32> -> vector<4x32xf32>
    %c0_3 = arith.constant 0 : index
    %c0_4 = arith.constant 0 : index
    %8 = vector.load %arg3[%c0_3, %c0_4] : memref<4x16xf32, #tpu.memory_space<vmem>>, vector<4x16xf32>
    %9 = tpu.concatenate %7, %8 in 1 : vector<4x32xf32>, vector<4x16xf32> -> vector<4x48xf32>
    %c0_5 = arith.constant 0 : index
    %c0_6 = arith.constant 0 : index
    %10 = vector.load %arg4[%c0_5, %c0_6] : memref<4x48xf32, #tpu.memory_space<vmem>>, vector<4x48xf32>
    tpu.vector_store %arg4[%c0_5, %c0_6], %9 {strides = array<i32>} : memref<4x48xf32, #tpu.memory_space<vmem>>, vector<4x48xf32>,
    return
  }
  func.func @transform_0(%arg0: i32) -> (i32, i32) {
    %c0_i32 = arith.constant 0 : i32
    %c0_i32_0 = arith.constant 0 : i32
    return %arg0, %c0_i32 : i32, i32
  }
  func.func @transform_1(%arg0: i32) -> (i32, i32) {
    %c0_i32 = arith.constant 0 : i32
    %c0_i32_0 = arith.constant 0 : i32
    %c0_i32_1 = arith.constant 0 : i32
    return %c0_i32, %c0_i32_0 : i32, i32
  }
  func.func @transform_2(%arg0: i32) -> (i32, i32) {
    %c0_i32 = arith.constant 0 : i32
    %c0_i32_0 = arith.constant 0 : i32
    return %arg0, %c0_i32 : i32, i32
  }
  func.func @transform_3(%arg0: i32) -> (i32, i32) {
    %c0_i32 = arith.constant 0 : i32
    %c0_i32_0 = arith.constant 0 : i32
    return %arg0, %c0_i32 : i32, i32
  }
}

</mosaic_0001>

<bundles_post_ra>
// kernel: tpu_custom_call.1
= control target key start
LH: loop header
LB: loop body
LE: loop exit
PB: predicated region body
PF: predicated region fallthrough
CT: control target
= control target key end

     0   :  { %8 = vsyncpa [#allocation3], 0  ;;  %s278_s0 = inlined_call_operand.vmem [shape: s32[4,1], index: 0, kind: input, shape index: {}]   ;;  %s279_s1 = inlined_call_operand.hbm [shape: f32[10,32], index: 1, kind: input, shape index: {}]   ;;  %s280_s2 = inlined_call_operand.vmem [shape: f32[4,16], index: 2, kind: input, shape index: {}]   ;;  %s281_s3 = inlined_call_operand.hbm [shape: f32[4,48], index: 3, kind: output, shape index: {}]  }
   0x1   :  { %9 = vsyncpa [#allocation4], 0  ;;  %s218_s12 = smov [#allocation2]   ;;  %s170_s16 = scalar_lea.hbm %s279_s1, 256 }
   0x2   :  { %s17_s13 = sshll.u32 %s218_s12, 4  ;;  %p171_p0 = scmp.ne.s32.totalorder %s279_s1, %s170_s16  ;;  %s18_s13 = int_to_ptr.vmem [resolvable:$true] %s17_s13 }
   0x3   :  { %p174_p1 = scmp.lt.u32.totalorder %s170_s16, %s279_s1 }
   0x5   :  { %p176_p2 = pnand %p174_p1, %p171_p0 }
   0x7   :  { %179 = shalt.err (!%p176_p2)
}
   0x8   :  { %s180_s21 = scalar_lea.vmem %s18_s13, 256  ;;  %p185_p4 = scmp.lt.s32.totalorder %s18_s13, %s18_s13 }
   0x9   :  { %p181_p3 = scmp.ne.s32.totalorder %s18_s13, %s180_s21  ;;  %p186_p5 = scmp.lt.s32.totalorder %s180_s21, %s180_s21 }
   0xb   :  { %p187_p6 = por %p186_p5, %p185_p4 }
   0xd   :  { %p188_p7 = pnand %p187_p6, %p181_p3 }
   0xf   :  { %191 = shalt.err (!%p188_p7)
}
  0x10   :  { %s219_s22 = smov 128   ;;  %s220_s23 = smov 8  }
  0x11   :  { %23 = dma.hbm_to_vmem [thread:$0]  %s279_s1, 256, %s18_s13, [#allocation3], %s219_s22, %s219_s22, %s220_s23  }
  0x12   :  { %214 = dma.done.wait [#allocation3], 256  }
  0x13   :  { %215 = vsyncadd [#allocation3], 4294967040  ;;  %v221_v0 = vmov 0   ;;  %v222_v1 = vmov 0.0|0.0   ;;  %vm44_vm0 = vcmask 1041408   ;;  %vm223_vm1 = vmmov 1  }
  0x14   :  { %169 = vset.pattern.permute.xlu0 %v221_v0  ;;  %155 = vmatprep.subr.bf16.mxu0 %v222_v1  ;;  %vm157_vm2 = vmpackc.low %vm44_vm0, %vm223_vm1  ;;  %v29_v2 = vld [vmem:[%s278_s0] sm:$0xf]  ;;  %v38_v3 = vld [vmem:[#allocation2] sm:$0xff]  ;;  %vm224_vm3 = vmmov 0   ;;  %v225_v6 = vmov 0.0   ;;  %s226_s29 = smov 32   ;;  %v30_v8 = vlaneseq }
  0x15   :  { %v39_v4 = vld [vmem:[#allocation2 + $0x8] sm:$0x3]  ;;  %33 = vperm.xlu0 %169, %v29_v2   ;;  %152 = vmatprep.mubr.msk.f32.mxu0 %vm224_vm3, %v225_v6  ;;  %v118_v7 = vld [vmem:[%s280_s2] sm:$0xf]  ;;  %vm40_vm4 = vcmask 80896   ;;  %s227_s0 = smov [#allocation5]  }
  0x16   :  { %v156_v5 = vpack.c.bf16 %v39_v4, %v38_v3  ;;  %v31_v9 = vand.u32 127, %v30_v8  ;;  %s133_s30 = sshll.u32 %s227_s0, 4  ;;  %vm123_vm6 = vcmask 261120   ;;  %vm125_vm7 = vcmask 388096   ;;  %s134_s30 = int_to_ptr.vmem [resolvable:$true] %s133_s30 }
  0x17   :  { %s192_s2 = scalar_lea.vmem %s134_s30, 64  ;;  %p197_p9 = scmp.lt.s32.totalorder %s134_s30, %s134_s30 }
  0x18   :  { %158 = vmatpush3.bf16.msk.msra.mxu0 %vm157_vm2, %v156_v5  ;;  %p193_p8 = scmp.ne.s32.totalorder %s134_s30, %s192_s2  ;;  %p198_p10 = scmp.lt.s32.totalorder %s192_s2, %s192_s2 }
  0x19   :  { %120 = vrot.lane.b32.xlu0 %v118_v7, %s226_s29 }
  0x1a   :  { %p199_p11 = por %p198_p10, %p197_p9 }
  0x1c   :  { %p200_p12 = pnand %p199_p11, %p193_p8 }
  0x94   :  { %v34_v10 = vpop.permute.xlu0 %33 }
  0x95   :  { %vm35_vm5 = vcmp.eq.s32.totalorder %v34_v10, %v31_v9 }
  0x96   :  { %v142_v11 = vsel %vm35_vm5, 1.0, %v225_v6 }
  0x97   :  { %153 = vmatmul.mubr.msk.f32.vlgmr.msra.gmra.mrb[0].mxu0 %vm40_vm4, %v142_v11 }
  0x98   :  { %v121_v12 = vpop.permute.xlu0 %120 }
 0x16a   :  { %v114_v13 = vpop.f32.mrb[0].mxu0 }
 0x16b   :  { %v124_v14 = vsel %vm123_vm6, %v114_v13, %v121_v12  ;;  %v154_v15 = vpop.f32.mrb[1].mxu0 }
 0x16c   :  { %126 = vst.msk [vmem:[#allocation5] sm:$0xf] %vm125_vm7, %v124_v14 }
 0x16d   :  { %203 = shalt.err (!%p200_p12)
}
 0x16e   :  { %s204_s6 = scalar_lea.hbm %s281_s3, 64 }
 0x16f   :  { %p205_p13 = scmp.ne.s32.totalorder %s281_s3, %s204_s6  ;;  %p208_p0 = scmp.lt.u32.totalorder %s204_s6, %s281_s3 }
 0x171   :  { %p210_p1 = pnand %p208_p0, %p205_p13 }
 0x173   :  { %213 = shalt.err (!%p210_p1)
}
 0x174   :  { %136 = dma.vmem_to_hbm [thread:$0]  %s134_s30, 64, %s281_s3, [#allocation4]  }
 0x175   :  { %216 = dma.done.wait [#allocation4], 64  }
 0x176   :  { %217 = vsyncadd [#allocation4], 4294967232 }
 0x177   :  { %140 = vsyncpa [#allocation3], 1 }
 0x178   :  { %141 = vsyncpa [#allocation4], 1 }

</bundles_post_ra>
